<compile_context>
chip_gen: v7x
topology: tpu7x:2x2x1
jax: 0.10.0
libtpu: 0.0.40
codegen_flags: <defaults>
</compile_context>

<pallas_src>
import functools

import jax
import jax.numpy as jnp
from jax import lax
from jax.experimental import pallas as pl
from jax.experimental.pallas import tpu as pltpu

# ----------------------------- scaled-down configuration -----------------------------
IMAGE_TOKEN_ID = 127          # stand-in for _IMAGE_TOKEN_ID (must lie inside the tiny vocab)
VOCAB_SIZE = 128
HIDDEN = 128                  # text hidden size (lane-dense: multiple of 128)
VIS_HIDDEN = 128              # image_dim_out (CLIP hidden size, lane-dense)
VIS_HEADS = 4
VIS_LAYERS = 2
VIS_INTER = 256
IMAGE_SIZE = 48               # scaled CLIP image size
PATCH = 2                     # scaled CLIP patch size -> 24x24 = 576 patches (needed by HD xform)
NUM_PATCHES = (IMAGE_SIZE // PATCH) ** 2
NUM_POS = NUM_PATCHES + 1     # +CLS
LAYER_IDX = -2                # vision_feature_layer
LM_HEADS = 4
LM_LAYERS = 2
LM_INTER = 256
ROPE_THETA = 10000.0
RMS_EPS = 1e-5
LN_EPS = 1e-5

_ATTN_VMEM_BYTES = 48 * 1024 * 1024   # materialized (H,T,T) scores exceed v5e's 16 MiB default


def _round_up(x, m):
    return ((x + m - 1) // m) * m


def _row_tile(m, cap=512):
    return min(cap, _round_up(m, 8))


def _full_spec(shape):
    # whole-array block, same block for every grid step
    return pl.BlockSpec(shape, lambda i: (0,) * len(shape))


# =============================== in-kernel math helpers ===============================
def _erf(x):
    # Abramowitz & Stegun 7.1.26 (|err| < 1.5e-7): keeps exact-GELU with Mosaic-safe elementwise ops.
    a1, a2, a3, a4, a5 = 0.254829592, -0.284496736, 1.421413741, -1.453152027, 1.061405429
    p = 0.3275911
    s = jnp.where(x < 0.0, -1.0, 1.0)
    z = jnp.abs(x)
    t = 1.0 / (1.0 + p * z)
    y = 1.0 - ((((a5 * t + a4) * t + a3) * t + a2) * t + a1) * t * jnp.exp(-z * z)
    return s * y


def _gelu(x):                         # nn.GELU() (erf form)
    return 0.5 * x * (1.0 + _erf(x * 0.7071067811865476))


def _sigmoid(x):
    return 1.0 / (1.0 + jnp.exp(-x))


def _layernorm(x, g, b, eps):
    mu = jnp.mean(x, axis=-1, keepdims=True)
    var = jnp.mean(jnp.square(x - mu), axis=-1, keepdims=True)
    return (x - mu) * lax.rsqrt(var + eps) * g + b


def _rmsnorm(x, g, eps):
    return x * lax.rsqrt(jnp.mean(jnp.square(x), axis=-1, keepdims=True) + eps) * g


def _dot(a, b):
    # bf16 MXU operands, f32 accumulation
    return lax.dot_general(a.astype(jnp.bfloat16), b.astype(jnp.bfloat16),
                           (((1,), (0,)), ((), ())),
                           preferred_element_type=jnp.float32)


def _bmm(a, b, ca, cb):
    # batched (leading dim 0) bf16 matmul, f32 accumulation
    return lax.dot_general(a.astype(jnp.bfloat16), b.astype(jnp.bfloat16),
                           (((ca,), (cb,)), ((0,), (0,))),
                           preferred_element_type=jnp.float32)


def _softmax_last(s):
    s = s - jnp.max(s, axis=-1, keepdims=True)
    p = jnp.exp(s)
    return p * pl.reciprocal(jnp.sum(p, axis=-1, keepdims=True), approx=True)


# =============================== Pallas kernels ===============================
def _matmul_kernel(x_ref, w_ref, o_ref):
    o_ref[...] = _dot(x_ref[...], w_ref[...]).astype(o_ref.dtype)


def _layernorm_kernel(x_ref, g_ref, b_ref, o_ref, *, eps):
    x = x_ref[...].astype(jnp.float32)
    o_ref[...] = _layernorm(x, g_ref[...], b_ref[...], eps).astype(o_ref.dtype)


def _rmsnorm_kernel(x_ref, g_ref, o_ref, *, eps):
    x = x_ref[...].astype(jnp.float32)
    o_ref[...] = _rmsnorm(x, g_ref[...], eps).astype(o_ref.dtype)


def _clip_layer_kernel(x_ref, g1_ref, b1_ref, wq_ref, bq_ref, wk_ref, bk_ref,
                       wv_ref, bv_ref, wo_ref, bo_ref, g2_ref, b2_ref,
                       w1_ref, fb1_ref, w2_ref, fb2_ref, o_ref, *, heads, eps):
    # fused CLIP encoder layer:
    #   LN1 -> per-head QKV -> softmax attention (all heads, one step) -> o_proj -> +res
    #   -> LN2 -> fc1 -> quick_gelu -> fc2 -> +res
    x = x_ref[0].astype(jnp.float32)                                   # (T, C)
    h = _layernorm(x, g1_ref[...], b1_ref[...], eps)
    hb = jnp.broadcast_to(h.astype(jnp.bfloat16)[None], (heads,) + h.shape)   # (H, T, C)
    q = _bmm(hb, wq_ref[...], 2, 1) + bq_ref[...]                      # (H, T, Dh); scale folded in
    k = _bmm(hb, wk_ref[...], 2, 1) + bk_ref[...]
    v = _bmm(hb, wv_ref[...], 2, 1) + bv_ref[...]
    p = _softmax_last(_bmm(q, k, 2, 2))                                # (H, T, T)
    ctx = _bmm(p, v, 2, 1)                                             # (H, T, Dh)
    o_h = _bmm(ctx, wo_ref[...], 2, 1)                                 # (H, T, C)
    x = x + jnp.sum(o_h, axis=0) + bo_ref[...]
    # --- MLP ---
    h2 = _layernorm(x, g2_ref[...], b2_ref[...], eps)
    y = _dot(h2, w1_ref[...]) + fb1_ref[...]
    y = y * _sigmoid(1.702 * y)                                        # quick_gelu
    y = _dot(y, w2_ref[...]) + fb2_ref[...]
    o_ref[0] = (x + y).astype(o_ref.dtype)


def _llama_layer_kernel(x_ref, g1_ref, wq_ref, wk_ref, wv_ref, wo_ref,
                        cos_ref, sin_ref, g2_ref, wg_ref, wu_ref, wd_ref,
                        o_ref, *, heads, eps):
    # fused Llama decoder layer:
    #   RMSNorm -> per-head QKV -> RoPE -> causal softmax attention -> o_proj -> +res
    #   -> RMSNorm -> gate/up -> SwiGLU -> down -> +res
    x = x_ref[...].astype(jnp.float32)                                 # (L, D)
    h = _rmsnorm(x, g1_ref[...], eps)
    hb = jnp.broadcast_to(h.astype(jnp.bfloat16)[None], (heads,) + h.shape)   # (H, L, D)
    q = _bmm(hb, wq_ref[...], 2, 1)                                    # (H, L, Dh); 1/sqrt(Dh) folded
    k = _bmm(hb, wk_ref[...], 2, 1)
    v = _bmm(hb, wv_ref[...], 2, 1)
    cos = cos_ref[...][None]                                           # (1, L, Dh/2)
    sin = sin_ref[...][None]
    half = cos.shape[-1]

    def rope(t):
        t1 = t[..., :half]
        t2 = t[..., half:]
        return jnp.concatenate([t1 * cos - t2 * sin, t2 * cos + t1 * sin], axis=-1)

    q = rope(q)
    k = rope(k)
    s = _bmm(q, k, 2, 2)                                               # (H, L, L)
    row = lax.broadcasted_iota(jnp.int32, s.shape, 1)
    col = lax.broadcasted_iota(jnp.int32, s.shape, 2)
    s = jnp.where(col <= row, s, -1e30)                                # causal; f32 softmax math
    p = _softmax_last(s)
    ctx = _bmm(p, v, 2, 1)                                             # (H, L, Dh)
    o_h = _bmm(ctx, wo_ref[...], 2, 1)                                 # (H, L, D)
    x = x + jnp.sum(o_h, axis=0)
    # --- MLP (SwiGLU) ---
    h2 = _rmsnorm(x, g2_ref[...], eps).astype(jnp.bfloat16)
    gate = _dot(h2, wg_ref[...])
    up = _dot(h2, wu_ref[...])
    a = gate * _sigmoid(gate) * up
    y = _dot(a, wd_ref[...])
    o_ref[...] = (x + y).astype(o_ref.dtype)


def _img_proj_kernel(x_ref, w1_ref, b1_ref, w2_ref, b2_ref, o_ref):
    # fused img_projection: Linear -> GELU -> Linear (input is lane-dense: 4*C = 512)
    y = _dot(x_ref[...], w1_ref[...]) + b1_ref[...]
    y = _gelu(y)
    y = _dot(y, w2_ref[...]) + b2_ref[...]
    o_ref[...] = y.astype(o_ref.dtype)


# =============================== pallas_call wrappers ===============================
@functools.partial(jax.jit, static_argnames=("tm",))
def pallas_matmul(x, w, tm=512):
    M, K = x.shape
    N = w.shape[1]
    tm = _row_tile(M, tm)
    return pl.pallas_call(
        _matmul_kernel,
        grid=(pl.cdiv(M, tm),),
        in_specs=[pl.BlockSpec((tm, K), lambda i: (i, 0)), _full_spec((K, N))],
        out_specs=pl.BlockSpec((tm, N), lambda i: (i, 0)),
        out_shape=jax.ShapeDtypeStruct((M, N), jnp.float32),
        compiler_params=pltpu.CompilerParams(dimension_semantics=("parallel",)),
    )(x, w)


@functools.partial(jax.jit, static_argnames=("eps", "tm"))
def pallas_layernorm(x, g, b, eps=LN_EPS, tm=512):
    M, D = x.shape
    tm = _row_tile(M, tm)
    return pl.pallas_call(
        functools.partial(_layernorm_kernel, eps=eps),
        grid=(pl.cdiv(M, tm),),
        in_specs=[pl.BlockSpec((tm, D), lambda i: (i, 0)),
                  _full_spec((1, D)), _full_spec((1, D))],
        out_specs=pl.BlockSpec((tm, D), lambda i: (i, 0)),
        out_shape=jax.ShapeDtypeStruct((M, D), jnp.float32),
        compiler_params=pltpu.CompilerParams(dimension_semantics=("parallel",)),
    )(x, g.reshape(1, D), b.reshape(1, D))


@functools.partial(jax.jit, static_argnames=("eps", "tm"))
def pallas_rmsnorm(x, g, eps=RMS_EPS, tm=512):
    M, D = x.shape
    tm = _row_tile(M, tm)
    return pl.pallas_call(
        functools.partial(_rmsnorm_kernel, eps=eps),
        grid=(pl.cdiv(M, tm),),
        in_specs=[pl.BlockSpec((tm, D), lambda i: (i, 0)), _full_spec((1, D))],
        out_specs=pl.BlockSpec((tm, D), lambda i: (i, 0)),
        out_shape=jax.ShapeDtypeStruct((M, D), jnp.float32),
        compiler_params=pltpu.CompilerParams(dimension_semantics=("parallel",)),
    )(x, g.reshape(1, D))


@jax.jit
def pallas_clip_layer(x, lw):
    N, T, C = x.shape
    H, _, Dh = lw["wq"].shape
    I = lw["fc1_w"].shape[1]
    return pl.pallas_call(
        functools.partial(_clip_layer_kernel, heads=H, eps=LN_EPS),
        grid=(N,),
        in_specs=[pl.BlockSpec((1, T, C), lambda i: (i, 0, 0)),
                  _full_spec((1, C)), _full_spec((1, C)),
                  _full_spec((H, C, Dh)), _full_spec((H, 1, Dh)),
                  _full_spec((H, C, Dh)), _full_spec((H, 1, Dh)),
                  _full_spec((H, C, Dh)), _full_spec((H, 1, Dh)),
                  _full_spec((H, Dh, C)), _full_spec((1, C)),
                  _full_spec((1, C)), _full_spec((1, C)),
                  _full_spec((C, I)), _full_spec((1, I)),
                  _full_spec((I, C)), _full_spec((1, C))],
        out_specs=pl.BlockSpec((1, T, C), lambda i: (i, 0, 0)),
        out_shape=jax.ShapeDtypeStruct((N, T, C), jnp.float32),
        compiler_params=pltpu.CompilerParams(
            dimension_semantics=("parallel",), vmem_limit_bytes=_ATTN_VMEM_BYTES),
    )(x, lw["ln1_g"], lw["ln1_b"], lw["wq"], lw["bq"], lw["wk"], lw["bk"],
      lw["wv"], lw["bv"], lw["wo"], lw["bo"], lw["ln2_g"], lw["ln2_b"],
      lw["fc1_w"], lw["fc1_b"], lw["fc2_w"], lw["fc2_b"])


@jax.jit
def pallas_llama_layer(x, lw, cos, sin):
    L, D = x.shape
    H, _, Dh = lw["wq"].shape
    I = lw["wd"].shape[0]
    half = cos.shape[1]
    return pl.pallas_call(
        functools.partial(_llama_layer_kernel, heads=H, eps=RMS_EPS),
        grid=(1,),
        in_specs=[_full_spec((L, D)), _full_spec((1, D)),
                  _full_spec((H, D, Dh)), _full_spec((H, D, Dh)),
                  _full_spec((H, D, Dh)), _full_spec((H, Dh, D)),
                  _full_spec((L, half)), _full_spec((L, half)),
                  _full_spec((1, D)), _full_spec((D, I)), _full_spec((D, I)),
                  _full_spec((I, D))],
        out_specs=_full_spec((L, D)),
        out_shape=jax.ShapeDtypeStruct((L, D), jnp.float32),
        compiler_params=pltpu.CompilerParams(
            dimension_semantics=("arbitrary",), vmem_limit_bytes=_ATTN_VMEM_BYTES),
    )(x, lw["input_ln"], lw["wq"], lw["wk"], lw["wv"], lw["wo"], cos, sin,
      lw["post_ln"], lw["wg"], lw["wu"], lw["wd"])


@jax.jit
def pallas_img_proj(x, w1, b1, w2, b2):
    M, K = x.shape
    Hd = w1.shape[1]
    No = w2.shape[1]
    tm = _row_tile(M)
    return pl.pallas_call(
        _img_proj_kernel,
        grid=(pl.cdiv(M, tm),),
        in_specs=[pl.BlockSpec((tm, K), lambda i: (i, 0)),
                  _full_spec((K, Hd)), _full_spec((1, Hd)),
                  _full_spec((Hd, No)), _full_spec((1, No))],
        out_specs=pl.BlockSpec((tm, No), lambda i: (i, 0)),
        out_shape=jax.ShapeDtypeStruct((M, No), jnp.float32),
        compiler_params=pltpu.CompilerParams(dimension_semantics=("parallel",)),
    )(x, w1, b1.reshape(1, Hd), w2, b2.reshape(1, No))


# =============================== parameters ===============================
class _KeyGen:
    def __init__(self, key):
        self.key = key

    def __call__(self, shape, scale=0.02):
        self.key, sub = jax.random.split(self.key)
        return scale * jax.random.normal(sub, shape, dtype=jnp.float32)


def init_params(key):
    kg = _KeyGen(key)
    C = VIS_HIDDEN
    vision = dict(
        patch_w=kg((3 * PATCH * PATCH, C)),          # Conv2d(3, C, PATCH, stride=PATCH, bias=False)
        class_emb=kg((C,)),
        pos_emb=kg((NUM_POS, C)),
        pre_ln_g=1.0 + kg((C,)), pre_ln_b=kg((C,)),
        layers=[dict(
            ln1_g=1.0 + kg((C,)), ln1_b=kg((C,)),
            q_w=kg((C, C)), q_b=kg((C,)),
            k_w=kg((C, C)), k_b=kg((C,)),
            v_w=kg((C, C)), v_b=kg((C,)),
            o_w=kg((C, C)), o_b=kg((C,)),
            ln2_g=1.0 + kg((C,)), ln2_b=kg((C,)),
            fc1_w=kg((C, VIS_INTER)), fc1_b=kg((VIS_INTER,)),
            fc2_w=kg((VIS_INTER, C)), fc2_b=kg((C,)),
        ) for _ in range(VIS_LAYERS)],
    )
    phi3_embed = dict(
        glb_GN=kg((1, 1, 4 * C)),
        sub_GN=kg((1, 1, 1, 4 * C)),
        proj1_w=kg((4 * C, HIDDEN)), proj1_b=kg((HIDDEN,)),
        proj2_w=kg((HIDDEN, HIDDEN)), proj2_b=kg((HIDDEN,)),
    )
    llm = dict(
        layers=[dict(
            input_ln=1.0 + kg((HIDDEN,)),
            qkv_w=kg((HIDDEN, 3 * HIDDEN)),
            o_w=kg((HIDDEN, HIDDEN)),
            post_ln=1.0 + kg((HIDDEN,)),
            gate_up_w=kg((HIDDEN, 2 * LM_INTER)),
            down_w=kg((LM_INTER, HIDDEN)),
        ) for _ in range(LM_LAYERS)],
        final_norm=1.0 + kg((HIDDEN,)),
    )
    wte = kg((VOCAB_SIZE + 1, HIDDEN))               # +1 mimics padded vocab (clamp_max_(vocab_size))
    return dict(vision=vision, phi3_embed=phi3_embed, llm=llm, wte=wte)


def _pack_clip_layer(lp, heads):
    # one-time weight packing: per-head stacking + scale folding -> zero transposes at call time
    C = lp["q_w"].shape[0]
    Dh = C // heads
    scale = Dh ** -0.5
    return dict(
        ln1_g=lp["ln1_g"].reshape(1, C), ln1_b=lp["ln1_b"].reshape(1, C),
        wq=(lp["q_w"] * scale).reshape(C, heads, Dh).transpose(1, 0, 2),     # (H, C, Dh)
        bq=(lp["q_b"] * scale).reshape(heads, 1, Dh),
        wk=lp["k_w"].reshape(C, heads, Dh).transpose(1, 0, 2),
        bk=lp["k_b"].reshape(heads, 1, Dh),
        wv=lp["v_w"].reshape(C, heads, Dh).transpose(1, 0, 2),
        bv=lp["v_b"].reshape(heads, 1, Dh),
        wo=lp["o_w"].reshape(heads, Dh, C),
        bo=lp["o_b"].reshape(1, C),
        ln2_g=lp["ln2_g"].reshape(1, C), ln2_b=lp["ln2_b"].reshape(1, C),
        fc1_w=lp["fc1_w"], fc1_b=lp["fc1_b"].reshape(1, -1),
        fc2_w=lp["fc2_w"], fc2_b=lp["fc2_b"].reshape(1, C),
    )


def _pack_llama_layer(lp, heads):
    D = lp["qkv_w"].shape[0]
    Dh = D // heads
    scale = Dh ** -0.5
    q_w, k_w, v_w = lp["qkv_w"][:, :D], lp["qkv_w"][:, D:2 * D], lp["qkv_w"][:, 2 * D:]
    I = lp["down_w"].shape[0]
    return dict(
        input_ln=lp["input_ln"].reshape(1, D),
        wq=(q_w * scale).reshape(D, heads, Dh).transpose(1, 0, 2),           # (H, D, Dh)
        wk=k_w.reshape(D, heads, Dh).transpose(1, 0, 2),
        wv=v_w.reshape(D, heads, Dh).transpose(1, 0, 2),
        wo=lp["o_w"].reshape(heads, Dh, D),
        post_ln=lp["post_ln"].reshape(1, D),
        wg=lp["gate_up_w"][:, :I], wu=lp["gate_up_w"][:, I:],
        wd=lp["down_w"],
    )


def pack_params(params):
    vp = params["vision"]
    vision = dict(
        patch_w=vp["patch_w"], class_emb=vp["class_emb"], pos_emb=vp["pos_emb"],
        pre_ln_g=vp["pre_ln_g"], pre_ln_b=vp["pre_ln_b"],
        layers=[_pack_clip_layer(lp, VIS_HEADS) for lp in vp["layers"]],
    )
    llm = dict(
        layers=[_pack_llama_layer(lp, LM_HEADS) for lp in params["llm"]["layers"]],
        final_norm=params["llm"]["final_norm"],
    )
    return dict(vision=vision, phi3_embed=params["phi3_embed"], llm=llm, wte=params["wte"])


# =============================== CLIP vision tower ===============================
def clip_vision_features(pixel_values, vp):
    # pixel_values: (N, 3, IMAGE_SIZE, IMAGE_SIZE) NCHW
    N = pixel_values.shape[0]
    g = IMAGE_SIZE // PATCH
    # non-overlapping patch extraction; flatten order (c, ph, pw) matches the conv-weight reshape
    x = pixel_values.reshape(N, 3, g, PATCH, g, PATCH)
    x = x.transpose(0, 2, 4, 1, 3, 5).reshape(N * g * g, 3 * PATCH * PATCH)
    x = pallas_matmul(x, vp["patch_w"]).reshape(N, g * g, VIS_HIDDEN)
    cls = jnp.broadcast_to(vp["class_emb"].reshape(1, 1, VIS_HIDDEN), (N, 1, VIS_HIDDEN))
    x = jnp.concatenate([cls, x], axis=1) + vp["pos_emb"][None, :, :]
    T = x.shape[1]
    x = pallas_layernorm(x.reshape(-1, VIS_HIDDEN), vp["pre_ln_g"], vp["pre_ln_b"]
                         ).reshape(N, T, VIS_HIDDEN)
    # vision_feature_layer = -2 (no post_layernorm): only the layers whose output is consumed run
    n_run = VIS_LAYERS + 1 + LAYER_IDX if LAYER_IDX < 0 else LAYER_IDX
    for lw in vp["layers"][:n_run]:
        x = pallas_clip_layer(x, lw)
    return x


# =============================== Phi3 HD image embedding ===============================
def vision_embed_tokens(input_ids, pixel_values, image_sizes, params):
    """Mirrors Phi3HDImageEmbedding.forward (hd_transform_order='glb_sub', type_feature='patch')."""
    vp, pp = params["vision"], params["phi3_embed"]
    input_ids_2d = input_ids.reshape(-1, input_ids.shape[-1])          # (1, L)
    positions = jnp.stack(jnp.nonzero(input_ids_2d == IMAGE_TOKEN_ID), axis=-1)   # (n, 2)
    select = positions.shape[0] > 0

    img_set_tensor, num_img_tokens = [], []
    if select:
        bs = pixel_values.shape[0]
        flat_pix = pixel_values.reshape(-1, 3, IMAGE_SIZE, IMAGE_SIZE)
        feats = clip_vision_features(flat_pix, vp)                     # (bs*(1+n), 577, C)
        feats = feats[:, 1:]                                           # 'patch' -> drop CLS
        H = int(round(feats.shape[1] ** 0.5))                          # 24
        C = VIS_HIDDEN
        feats = feats.reshape(bs, -1, H * H, C)
        sub_GN, glb_GN = pp["sub_GN"], pp["glb_GN"]
        output_imgs, output_len = [], []
        for _bs in range(bs):
            h = int(image_sizes[_bs][0]) // 336
            w = int(image_sizes[_bs][1]) // 336
            B_ = h * w
            glb = feats[_bs, :1]                                       # (1, 576, C)
            glb_img = glb.reshape(1, H // 2, 2, H // 2, 2, C).transpose(0, 1, 3, 2, 4, 5
                                  ).reshape(1, H // 2, H // 2, 4 * C)
            temp_glb_GN = jnp.tile(sub_GN, (1, H // 2, 1, 1))
            glb_img = jnp.concatenate([glb_img, temp_glb_GN], axis=2).reshape(1, -1, 4 * C)
            sub = feats[_bs, 1:][:B_]
            sub_img = sub.reshape(B_, H // 2, 2, H // 2, 2, C).transpose(0, 1, 3, 2, 4, 5
                                  ).reshape(B_, -1, 4 * C)
            sub_img = sub_img.reshape(1, h, w, 12, 12, -1).transpose(0, 1, 3, 2, 4, 5
                                      ).reshape(1, h * 12, w * 12, 4 * C)
            temp_sub_GN = jnp.tile(sub_GN, (1, h * 12, 1, 1))
            sub_img = jnp.concatenate([sub_img, temp_sub_GN], axis=2).reshape(1, -1, 4 * C)
            output_imgs.append(jnp.concatenate([glb_img, glb_GN, sub_img], axis=1))  # 'glb_sub'
            output_len.append(int((h * w + 1) * 144 + 1 + (h + 1) * 12))
        num_img_tokens = output_len
        for out_img in output_imgs:                                    # img_projection (fused kernel)
            y = pallas_img_proj(out_img.reshape(-1, 4 * C),
                                pp["proj1_w"], pp["proj1_b"], pp["proj2_w"], pp["proj2_b"])
            img_set_tensor.append(y)

    ids = jnp.clip(input_ids_2d, 0, VOCAB_SIZE)                        # clamp_min_(0).clamp_max_(vocab)
    hidden = params["wte"][ids]                                        # (1, L, HIDDEN)
    if select:
        idx = 0
        for i, cnt in enumerate(num_img_tokens):
            r, c = int(positions[idx, 0]), int(positions[idx, 1])
            hidden = hidden.at[r, c:c + cnt].set(img_set_tensor[i].astype(hidden.dtype))
            idx += cnt
    if hidden.shape[0] == 1:                                           # .squeeze(0)
        hidden = hidden[0]
    return hidden


# =============================== Llama decoder ===============================
def llama_model(inputs_embeds, positions, params):
    x = inputs_embeds                                  # (L, HIDDEN)
    Dh = HIDDEN // LM_HEADS
    half = Dh // 2
    # neox-style RoPE angles computed once, shared by every layer (glue, tiny)
    inv_freq = 1.0 / (ROPE_THETA ** (jnp.arange(0, half, dtype=jnp.float32) * 2.0 / Dh))
    ang = positions.astype(jnp.float32)[:, None] * inv_freq[None, :]   # (L, half)
    cos, sin = jnp.cos(ang), jnp.sin(ang)
    for lw in params["llm"]["layers"]:
        x = pallas_llama_layer(x, lw, cos, sin)
    return pallas_rmsnorm(x, params["llm"]["final_norm"])


# =============================== top-level forward ===============================
def phi3v_forward(input_ids, positions, pixel_values, image_sizes, params):
    """Phi3VForCausalLM.forward with an image input: returns hidden_states (L, HIDDEN)."""
    inputs_embeds = vision_embed_tokens(input_ids, pixel_values, image_sizes, params)
    hidden_states = llama_model(inputs_embeds, positions, params)
    return hidden_states


# =============================== demo ===============================
if __name__ == "__main__":
    params = pack_params(init_params(jax.random.PRNGKey(0)))

    # one image, one 336x336 HD crop -> (1 global + 1 sub crop)
    image_sizes = jnp.array([[336, 336]], dtype=jnp.int32)             # (batch, 2) = (h, w)
    pixel_values = jax.random.normal(jax.random.PRNGKey(1),
                                     (1, 2, 3, IMAGE_SIZE, IMAGE_SIZE), jnp.float32)

    # image feature length for h=w=1: (1*1+1)*144 + 1 + (1+1)*12 = 313
    img_feat_len = (1 * 1 + 1) * 144 + 1 + (1 + 1) * 12
    prefix = [5, 9, 11]
    suffix = [7, 3, 2, 1]
    input_ids = jnp.array(prefix + [IMAGE_TOKEN_ID] * img_feat_len + suffix, dtype=jnp.int32)
    positions = jnp.arange(input_ids.shape[0], dtype=jnp.int32)

    hidden = phi3v_forward(input_ids, positions, pixel_values, image_sizes, params)
    hidden = jax.block_until_ready(hidden)

    assert hidden.shape == (int(input_ids.shape[0]), HIDDEN), hidden.shape
    assert bool(jnp.all(jnp.isfinite(hidden)))
    print("KERNEL_OK")
</pallas_src>

<mosaic_0001>
module attributes {stable_mosaic.version = 11 : i64} {
  func.func @_matmul_kernel(%arg0: i32, %arg1: memref<512x12xf32, #tpu.memory_space<vmem>>, %arg2: memref<12x128xf32, #tpu.memory_space<vmem>>, %arg3: memref<512x128xf32, #tpu.memory_space<vmem>>) attributes {dimension_semantics = [#tpu.dimension_semantics<parallel>], iteration_bounds = array<i64: 3>, scalar_prefetch = 0 : i64, scratch_operands = 0 : i64, tpu.core_type = #tpu.core_type<tc>, window_params = [{transform_indices = @transform_0, window_bounds = array<i64: 512, 12>}, {pipeline_mode = #tpu.pipeline_mode<synchronous>, transform_indices = @transform_1, window_bounds = array<i64: 12, 128>}, {transform_indices = @transform_2, window_bounds = array<i64: 512, 128>}]} {
    %c0 = arith.constant 0 : index
    %c0_0 = arith.constant 0 : index
    %0 = vector.load %arg1[%c0, %c0_0] : memref<512x12xf32, #tpu.memory_space<vmem>>, vector<512x12xf32>
    %c0_1 = arith.constant 0 : index
    %c0_2 = arith.constant 0 : index
    %1 = vector.load %arg2[%c0_1, %c0_2] : memref<12x128xf32, #tpu.memory_space<vmem>>, vector<12x128xf32>
    %2 = arith.truncf %0 : vector<512x12xf32> to vector<512x12xbf16>
    %3 = arith.truncf %1 : vector<12x128xf32> to vector<12x128xbf16>
    %cst = arith.constant dense<0.000000e+00> : vector<512x128xf32>
    %4 = tpu.matmul %2, %3, %cst {dimension_numbers = #tpu.dot_dimension_numbers<[1], [0], [0], [1], [0, 0, 1, 1], [], []>} : vector<512x12xbf16>, vector<12x128xbf16>, vector<512x128xf32> -> vector<512x128xf32>
    %c0_3 = arith.constant 0 : index
    %c0_4 = arith.constant 0 : index
    %5 = vector.load %arg3[%c0_3, %c0_4] : memref<512x128xf32, #tpu.memory_space<vmem>>, vector<512x128xf32>
    tpu.vector_store %arg3[%c0_3, %c0_4], %4 {strides = array<i32>} : memref<512x128xf32, #tpu.memory_space<vmem>>, vector<512x128xf32>,
    return
  }
  func.func @transform_0(%arg0: i32) -> (i32, i32) {
    %c0_i32 = arith.constant 0 : i32
    %c0_i32_0 = arith.constant 0 : i32
    return %arg0, %c0_i32 : i32, i32
  }
  func.func @transform_1(%arg0: i32) -> (i32, i32) {
    %c0_i32 = arith.constant 0 : i32
    %c0_i32_0 = arith.constant 0 : i32
    %c0_i32_1 = arith.constant 0 : i32
    return %c0_i32, %c0_i32_0 : i32, i32
  }
  func.func @transform_2(%arg0: i32) -> (i32, i32) {
    %c0_i32 = arith.constant 0 : i32
    %c0_i32_0 = arith.constant 0 : i32
    return %arg0, %c0_i32 : i32, i32
  }
}

</mosaic_0001>

<bundles_post_ra>
// kernel: pallas_matmul.1
= control target key start
LH: loop header
LB: loop body
LE: loop exit
PB: predicated region body
PF: predicated region fallthrough
CT: control target
= control target key end

     0   :  { %7 = vsyncpa [#allocation3], 0  ;;  %s1371_s0 = inlined_call_operand.vmem [shape: f32[1152,12], index: 0, kind: input, shape index: {}]   ;;  %s1372_s1 = inlined_call_operand.vmem [shape: f32[12,128], index: 1, kind: input, shape index: {}]   ;;  %s1373_s2 = inlined_call_operand.hbm [shape: f32[1152,128], index: 2, kind: output, shape index: {}]  }
   0x1   :  { %9 = vsyncpa [#allocation3 + $0x1], 0  ;;  %s1079_s9 = smov 0   ;;  %s1081_s10 = smov 0  }
   0x2   :  { %s1083_s11 = smov 0   ;;  %s1085_s12 = smov 0  }
   0x3 LB: > { %s1100_s13 = sadd.s32 4294967295, %s1059_s12   ;;  %s805_s14 = sadd.s32 4294967294, %s1059_s12   ;;  %s1059_s12 = sphi %s1085_s12, %s1379_s12   ;;  %s1055_s11 = sphi %s1083_s11, %s1378_s11   ;;  %s1051_s10 = sphi %s1081_s10, %s1377_s10   ;;  %s1047_s9 = sphi %s1079_s9, %s1376_s9  }
   0x4   : > { %s1104_s15 = sadd.s32 1, %s1059_s12   ;;  %s69_s16 = sadd.s32 1, %s1055_s11 }
   0x5   : > { %s66_s17 = ssub.s32 %s1059_s12, %s1104_s15  ;;  %p79_p0 = scmp.ne.s32.totalorder %s1055_s11, %s1051_s10 }
   0x6   : > { %p67_p1 = scmp.eq.s32.totalorder %s66_s17, 0  ;;  %p80_p2 = scmp.eq.s32.totalorder %s1100_s13, 2 }
   0x7   : > { %p85_p3 = scmp.ne.s32.totalorder %s1051_s10, %s1047_s9  ;;  %p86_p4 = scmp.eq.s32.totalorder %s805_s14, 2 }
   0x8   : > { %s1115_s18 = scalar_select %p67_p1, %s1055_s11, %s69_s16  }
   0x9   : > { %p1117_p5 = por %p80_p2, %p79_p0  ;;  %p1121_p6 = por %p86_p4, %p85_p3 }
   0xa   : > { %p808_p7 = scmp.ge.s32.totalorder %s1059_s12, 1  ;;  %p124_p8 = scmp.lt.s32.totalorder %s1059_s12, 4 }
   0xc   : > { %p125_p9 = pnand %p808_p7, %p124_p8 }
   0xd   : > { %v234_v0 = vld [vmem:[%s1372_s1] sm:$0xff] (!%p125_p9)  ;;  %v235_v1 = vld [vmem:[%s1372_s1 + $0x8] sm:$0xf] (!%p125_p9)  ;;  %vm366_vm0 = vcmask (!%p125_p9), 1045504   ;;  %s1134_s25 = sshll.u32 (!%p125_p9), %s1100_s13, 6  ;;  %vm269_vm1 = vcmask (!%p125_p9), 97280  }
   0xe   : > { %128 = sbr.rel (%p125_p9) target bundleno = 330 (0x14a), region = 28  ;;  %v268_v2 = vpack.c.bf16 (!%p125_p9), %v235_v1, %v234_v0  ;;  %p155_p10 = scmp.lt.s32.totalorder (!%p125_p9), %s1134_s25, 143 }
   0xf   : > { %s147_s3 = sand.u32 (!%p125_p9), 1, %s1051_s10  }
  0x10   : > { %955 = vmatprep.subr.msk.bf16.mxu0 (!%p125_p9), %vm366_vm0, %v268_v2  ;;  %956 = vmatprep.subr.msk.bf16.mxu1 (!%p125_p9), %vm366_vm0, %v268_v2  ;;  %v368_v3 = vsel (!%p125_p9), %vm366_vm0, %v268_v2, 0  ;;  %s809_s4 = sshll.u32 (!%p125_p9), %s147_s3, 9  ;;  %s1310_s6 = scalar_lea.sflag (!%p125_p9), [#allocation3], %s147_s3 }
  0x11   : > { %888 = vmatpush3.bf16.msra.mxu0 (!%p125_p9), %v368_v3  ;;  %954 = vmatpush3.bf16.msra.mxu1 (!%p125_p9), %v368_v3  ;;  %s1242_s5 = scalar_lea.vmem (!%p125_p9), [#allocation2], %s809_s4 }
  0x15   : > { %s156_s26 = scalar_select %p155_p10, %s1134_s25, 143 }
  0x16   : > { %s732_s7 = ssub.s32 (%p1117_p5), 144, %s1134_s25 }
  0x17   : > { %s811_s27 = sshll.u32 %s156_s26, 3  ;;  %p733_p11 = scmp.lt.s32.totalorder (%p1117_p5), %s732_s7, 64 }
  0x18   : > { %s1141_s30 = scalar_lea.vmem %s1371_s0, %s811_s27 }
  0x19   : > { %v170_v4 = vld [vmem:[%s1141_s30] sm:$0xff]  ;;  %v171_v5 = vld [vmem:[%s1141_s30 + $0x8] sm:$0xff]  ;;  %v172_v9 = vld [vmem:[%s1141_s30 + $0x10] sm:$0xff] }
  0x1a   : > { %v202_v6 = vld [vmem:[%s1141_s30 + $0x100] sm:$0xff]  ;;  %v236_v7 = vpack.c.bf16 %v171_v5, %v170_v4  ;;  %v203_v8 = vld [vmem:[%s1141_s30 + $0x108] sm:$0xff]  ;;  %v173_v10 = vld [vmem:[%s1141_s30 + $0x18] sm:$0xff] }
  0x1b   : > { %v252_v11 = vpack.c.bf16 %v203_v8, %v202_v6  ;;  %v237_v12 = vpack.c.bf16 %v173_v10, %v172_v9  ;;  %v204_v13 = vld [vmem:[%s1141_s30 + $0x110] sm:$0xff]  ;;  %v205_v14 = vld [vmem:[%s1141_s30 + $0x118] sm:$0xff]  ;;  %v174_v15 = vld [vmem:[%s1141_s30 + $0x20] sm:$0xff] }
  0x1c   : > { %889 = vmatprep.mubr.msk.bf16.mxu0 %vm269_vm1, %v236_v7  ;;  %v253_v16 = vpack.c.bf16 %v205_v14, %v204_v13  ;;  %v175_v17 = vld [vmem:[%s1141_s30 + $0x28] sm:$0xff]  ;;  %v206_v18 = vld [vmem:[%s1141_s30 + $0x120] sm:$0xff]  ;;  %v176_v22 = vld [vmem:[%s1141_s30 + $0x30] sm:$0xff] }
  0x1d   : > { %v207_v19 = vld [vmem:[%s1141_s30 + $0x128] sm:$0xff]  ;;  %921 = vmatprep.mubr.msk.bf16.mxu1 %vm269_vm1, %v252_v11  ;;  %890 = vmatmul.mubr.msk.bf16.vlgmr.msra.gmra.mrb[0].mxu0 %vm269_vm1, %v237_v12  ;;  %v238_v20 = vpack.c.bf16 %v175_v17, %v174_v15  ;;  %v177_v23 = vld [vmem:[%s1141_s30 + $0x38] sm:$0xff]  ;;  %v208_v24 = vld [vmem:[%s1141_s30 + $0x130] sm:$0xff] }
  0x1e   : > { %v254_v21 = vpack.c.bf16 %v207_v19, %v206_v18  ;;  %922 = vmatmul.mubr.msk.bf16.vlgmr.msra.gmra.mrb[0].mxu1 %vm269_vm1, %v253_v16  ;;  %v209_v25 = vld [vmem:[%s1141_s30 + $0x138] sm:$0xff]  ;;  %v178_v26 = vld [vmem:[%s1141_s30 + $0x40] sm:$0xff]  ;;  %v179_v27 = vld [vmem:[%s1141_s30 + $0x48] sm:$0xff]  ;;  %v239_v30 = vpack.c.bf16 %v177_v23, %v176_v22 }
  0x1f   : > { %893 = vmatprep.mubr.msk.bf16.mxu0 %vm269_vm1, %v238_v20  ;;  %v210_v28 = vld [vmem:[%s1141_s30 + $0x140] sm:$0xff]  ;;  %v211_v29 = vld [vmem:[%s1141_s30 + $0x148] sm:$0xff]  ;;  %v255_v31 = vpack.c.bf16 %v209_v25, %v208_v24  ;;  %v240_v32 = vpack.c.bf16 %v179_v27, %v178_v26  ;;  %v180_v34 = vld [vmem:[%s1141_s30 + $0x50] sm:$0xff] }
  0x20   : > { %925 = vmatprep.mubr.msk.bf16.mxu1 %vm269_vm1, %v254_v21  ;;  %v256_v33 = vpack.c.bf16 %v211_v29, %v210_v28  ;;  %v181_v35 = vld [vmem:[%s1141_s30 + $0x58] sm:$0xff]  ;;  %v212_v36 = vld [vmem:[%s1141_s30 + $0x150] sm:$0xff]  ;;  %v182_v38 = vld [vmem:[%s1141_s30 + $0x60] sm:$0xff] }
  0x21   : > { %v213_v37 = vld [vmem:[%s1141_s30 + $0x158] sm:$0xff]  ;;  %v183_v39 = vld [vmem:[%s1141_s30 + $0x68] sm:$0xff]  ;;  %v214_v40 = vld [vmem:[%s1141_s30 + $0x160] sm:$0xff]  ;;  %v241_v42 = vpack.c.bf16 %v181_v35, %v180_v34 }
  0x22   : > { %v215_v41 = vld [vmem:[%s1141_s30 + $0x168] sm:$0xff]  ;;  %v257_v43 = vpack.c.bf16 %v213_v37, %v212_v36  ;;  %v242_v44 = vpack.c.bf16 %v183_v39, %v182_v38  ;;  %v184_v46 = vld [vmem:[%s1141_s30 + $0x70] sm:$0xff]  ;;  %v185_v47 = vld [vmem:[%s1141_s30 + $0x78] sm:$0xff] }
  0x23   : > { %v258_v45 = vpack.c.bf16 %v215_v41, %v214_v40  ;;  %v216_v48 = vld [vmem:[%s1141_s30 + $0x170] sm:$0xff]  ;;  %v217_v49 = vld [vmem:[%s1141_s30 + $0x178] sm:$0xff]  ;;  %v186_v50 = vld [vmem:[%s1141_s30 + $0x80] sm:$0xff]  ;;  %v243_v54 = vpack.c.bf16 %v185_v47, %v184_v46 }
  0x24   : > { %v187_v51 = vld [vmem:[%s1141_s30 + $0x88] sm:$0xff]  ;;  %v218_v52 = vld [vmem:[%s1141_s30 + $0x180] sm:$0xff]  ;;  %v259_v55 = vpack.c.bf16 %v217_v49, %v216_v48  ;;  %v188_v58 = vld [vmem:[%s1141_s30 + $0x90] sm:$0xff] }
  0x25   : > { %894 = vmatmul.mubr.msk.bf16.gmra.mrb[4].mxu0 %vm269_vm1, %v239_v30  ;;  %v219_v53 = vld [vmem:[%s1141_s30 + $0x188] sm:$0xff]  ;;  %v244_v56 = vpack.c.bf16 %v187_v51, %v186_v50  ;;  %v189_v59 = vld [vmem:[%s1141_s30 + $0x98] sm:$0xff]  ;;  %v220_v60 = vld [vmem:[%s1141_s30 + $0x190] sm:$0xff] }
  0x26   : > { %926 = vmatmul.mubr.msk.bf16.gmra.mrb[4].mxu1 %vm269_vm1, %v255_v31  ;;  %897 = vmatprep.mubr.msk.bf16.mxu0 %vm269_vm1, %v240_v32  ;;  %v260_v57 = vpack.c.bf16 %v219_v53, %v218_v52  ;;  %v221_v61 = vld [vmem:[%s1141_s30 + $0x198] sm:$0xff]  ;;  %v190_v62 = vld [vmem:[%s1141_s30 + $0xa0] sm:$0xff]  ;;  %v191_v63 = vld [vmem:[%s1141_s30 + $0xa8] sm:$0xff]  ;;  %v245_v2 = vpack.c.bf16 %v189_v59, %v188_v58 }
  0x27   : > { %929 = vmatprep.mubr.msk.bf16.mxu1 %vm269_vm1, %v256_v33  ;;  %v222_v0 = vld [vmem:[%s1141_s30 + $0x1a0] sm:$0xff]  ;;  %v223_v1 = vld [vmem:[%s1141_s30 + $0x1a8] sm:$0xff]  ;;  %v261_v3 = vpack.c.bf16 %v221_v61, %v220_v60  ;;  %v246_v4 = vpack.c.bf16 %v191_v63, %v190_v62  ;;  %v192_v6 = vld [vmem:[%s1141_s30 + $0xb0] sm:$0xff] }
  0x28   : > { %v262_v5 = vpack.c.bf16 %v223_v1, %v222_v0  ;;  %v193_v7 = vld [vmem:[%s1141_s30 + $0xb8] sm:$0xff]  ;;  %v224_v8 = vld [vmem:[%s1141_s30 + $0x1b0] sm:$0xff]  ;;  %v194_v10 = vld [vmem:[%s1141_s30 + $0xc0] sm:$0xff] }
  0x29   : > { %v225_v9 = vld [vmem:[%s1141_s30 + $0x1b8] sm:$0xff]  ;;  %v195_v11 = vld [vmem:[%s1141_s30 + $0xc8] sm:$0xff]  ;;  %v226_v12 = vld [vmem:[%s1141_s30 + $0x1c0] sm:$0xff]  ;;  %v247_v14 = vpack.c.bf16 %v193_v7, %v192_v6 }
  0x2a   : > { %v227_v13 = vld [vmem:[%s1141_s30 + $0x1c8] sm:$0xff]  ;;  %v263_v15 = vpack.c.bf16 %v225_v9, %v224_v8  ;;  %v248_v16 = vpack.c.bf16 %v195_v11, %v194_v10  ;;  %v196_v18 = vld [vmem:[%s1141_s30 + $0xd0] sm:$0xff]  ;;  %v197_v19 = vld [vmem:[%s1141_s30 + $0xd8] sm:$0xff] }
  0x2b   : > { %v264_v17 = vpack.c.bf16 %v227_v13, %v226_v12  ;;  %v228_v20 = vld [vmem:[%s1141_s30 + $0x1d0] sm:$0xff]  ;;  %v229_v21 = vld [vmem:[%s1141_s30 + $0x1d8] sm:$0xff]  ;;  %v198_v22 = vld [vmem:[%s1141_s30 + $0xe0] sm:$0xff]  ;;  %v249_v26 = vpack.c.bf16 %v197_v19, %v196_v18 }
  0x2c   : > { %v199_v23 = vld [vmem:[%s1141_s30 + $0xe8] sm:$0xff]  ;;  %v230_v24 = vld [vmem:[%s1141_s30 + $0x1e0] sm:$0xff]  ;;  %v265_v27 = vpack.c.bf16 %v229_v21, %v228_v20  ;;  %v200_v30 = vld [vmem:[%s1141_s30 + $0xf0] sm:$0xff] }
  0x2d   : > { %898 = vmatmul.mubr.msk.bf16.gmra.mrb[8].mxu0 %vm269_vm1, %v241_v42  ;;  %v231_v25 = vld [vmem:[%s1141_s30 + $0x1e8] sm:$0xff]  ;;  %v250_v28 = vpack.c.bf16 %v199_v23, %v198_v22  ;;  %v201_v31 = vld [vmem:[%s1141_s30 + $0xf8] sm:$0xff]  ;;  %v232_v32 = vld [vmem:[%s1141_s30 + $0x1f0] sm:$0xff] }
  0x2e   : > { %930 = vmatmul.mubr.msk.bf16.gmra.mrb[8].mxu1 %vm269_vm1, %v257_v43  ;;  %901 = vmatprep.mubr.msk.bf16.mxu0 %vm269_vm1, %v242_v44  ;;  %v266_v29 = vpack.c.bf16 %v231_v25, %v230_v24  ;;  %v233_v33 = vld [vmem:[%s1141_s30 + $0x1f8] sm:$0xff]  ;;  %v251_v34 = vpack.c.bf16 %v201_v31, %v200_v30 }
  0x2f   : > { %933 = vmatprep.mubr.msk.bf16.mxu1 %vm269_vm1, %v258_v45  ;;  %v267_v35 = vpack.c.bf16 %v233_v33, %v232_v32 }
  0x35   : > { %902 = vmatmul.mubr.msk.bf16.gmra.mrb[12].mxu0 %vm269_vm1, %v243_v54 }
  0x36   : > { %934 = vmatmul.mubr.msk.bf16.gmra.mrb[12].mxu1 %vm269_vm1, %v259_v55  ;;  %905 = vmatprep.mubr.msk.bf16.mxu0 %vm269_vm1, %v244_v56 }
  0x37   : > { %937 = vmatprep.mubr.msk.bf16.mxu1 %vm269_vm1, %v260_v57 }
  0x3d   : > { %906 = vmatmul.mubr.msk.bf16.gmra.mrb[16].mxu0 %vm269_vm1, %v245_v2 }
  0x3e   : > { %938 = vmatmul.mubr.msk.bf16.gmra.mrb[16].mxu1 %vm269_vm1, %v261_v3  ;;  %909 = vmatprep.mubr.msk.bf16.mxu0 %vm269_vm1, %v246_v4 }
  0x3f   : > { %941 = vmatprep.mubr.msk.bf16.mxu1 %vm269_vm1, %v262_v5 }
  0x45   : > { %910 = vmatmul.mubr.msk.bf16.gmra.mrb[20].mxu0 %vm269_vm1, %v247_v14 }
  0x46   : > { %942 = vmatmul.mubr.msk.bf16.gmra.mrb[20].mxu1 %vm269_vm1, %v263_v15  ;;  %913 = vmatprep.mubr.msk.bf16.mxu0 %vm269_vm1, %v248_v16 }
  0x47   : > { %945 = vmatprep.mubr.msk.bf16.mxu1 %vm269_vm1, %v264_v17 }
  0x4d   : > { %914 = vmatmul.mubr.msk.bf16.gmra.mrb[24].mxu0 %vm269_vm1, %v249_v26 }
  0x4e   : > { %946 = vmatmul.mubr.msk.bf16.gmra.mrb[24].mxu1 %vm269_vm1, %v265_v27  ;;  %917 = vmatprep.mubr.msk.bf16.mxu0 %vm269_vm1, %v250_v28 }
  0x4f   : > { %949 = vmatprep.mubr.msk.bf16.mxu1 %vm269_vm1, %v266_v29 }
  0x55   : > { %918 = vmatmul.mubr.msk.bf16.gmra.mrb[28].mxu0 %vm269_vm1, %v251_v34 }
  0x56   : > { %950 = vmatmul.mubr.msk.bf16.gmra.mrb[28].mxu1 %vm269_vm1, %v267_v35 }
  0xf0   : > { %v891_v36 = vpop.f32.mrb[0].mxu0 }
  0xf1   : > { %661 = vst [vmem:[%s1242_s5 + $0x10] sm:$0xff] %v891_v36  ;;  %v923_v37 = vpop.f32.mrb[0].mxu1  ;;  %v404_v38 = vpop.f32.mrb[1].mxu0 }
  0xf2   : > { %693 = vst [vmem:[%s1242_s5 + $0x110] sm:$0xff] %v923_v37  ;;  %659 = vst [vmem:[%s1242_s5] sm:$0xff] %v404_v38  ;;  %v532_v39 = vpop.f32.mrb[1].mxu1  ;;  %v892_v40 = vpop.f32.mrb[2].mxu0 }
  0xf3   : > { %691 = vst [vmem:[%s1242_s5 + $0x100] sm:$0xff] %v532_v39  ;;  %662 = vst [vmem:[%s1242_s5 + $0x18] sm:$0xff] %v892_v40  ;;  %v924_v41 = vpop.f32.mrb[2].mxu1  ;;  %v407_v42 = vpop.f32.mrb[3].mxu0 }
  0xf4   : > { %694 = vst [vmem:[%s1242_s5 + $0x118] sm:$0xff] %v924_v41  ;;  %660 = vst [vmem:[%s1242_s5 + $0x8] sm:$0xff] %v407_v42  ;;  %v535_v43 = vpop.f32.mrb[3].mxu1 }
  0xf5   : > { %692 = vst [vmem:[%s1242_s5 + $0x108] sm:$0xff] %v535_v43 }
  0xf8   : > { %v895_v44 = vpop.f32.mrb[4].mxu0 }
  0xf9   : > { %665 = vst [vmem:[%s1242_s5 + $0x30] sm:$0xff] %v895_v44  ;;  %v927_v45 = vpop.f32.mrb[4].mxu1  ;;  %v420_v46 = vpop.f32.mrb[5].mxu0 }
  0xfa   : > { %697 = vst [vmem:[%s1242_s5 + $0x130] sm:$0xff] %v927_v45  ;;  %663 = vst [vmem:[%s1242_s5 + $0x20] sm:$0xff] %v420_v46  ;;  %v548_v47 = vpop.f32.mrb[5].mxu1  ;;  %v896_v48 = vpop.f32.mrb[6].mxu0 }
  0xfb   : > { %695 = vst [vmem:[%s1242_s5 + $0x120] sm:$0xff] %v548_v47  ;;  %666 = vst [vmem:[%s1242_s5 + $0x38] sm:$0xff] %v896_v48  ;;  %v928_v49 = vpop.f32.mrb[6].mxu1  ;;  %v423_v50 = vpop.f32.mrb[7].mxu0 }
  0xfc   : > { %698 = vst [vmem:[%s1242_s5 + $0x138] sm:$0xff] %v928_v49  ;;  %664 = vst [vmem:[%s1242_s5 + $0x28] sm:$0xff] %v423_v50  ;;  %v551_v51 = vpop.f32.mrb[7].mxu1 }
  0xfd   : > { %696 = vst [vmem:[%s1242_s5 + $0x128] sm:$0xff] %v551_v51 }
 0x100   : > { %v899_v52 = vpop.f32.mrb[8].mxu0 }
 0x101   : > { %669 = vst [vmem:[%s1242_s5 + $0x50] sm:$0xff] %v899_v52  ;;  %v931_v53 = vpop.f32.mrb[8].mxu1  ;;  %v436_v54 = vpop.f32.mrb[9].mxu0 }
 0x102   : > { %701 = vst [vmem:[%s1242_s5 + $0x150] sm:$0xff] %v931_v53  ;;  %667 = vst [vmem:[%s1242_s5 + $0x40] sm:$0xff] %v436_v54  ;;  %v564_v55 = vpop.f32.mrb[9].mxu1  ;;  %v900_v56 = vpop.f32.mrb[10].mxu0 }
 0x103   : > { %699 = vst [vmem:[%s1242_s5 + $0x140] sm:$0xff] %v564_v55  ;;  %670 = vst [vmem:[%s1242_s5 + $0x58] sm:$0xff] %v900_v56  ;;  %v932_v57 = vpop.f32.mrb[10].mxu1  ;;  %v439_v58 = vpop.f32.mrb[11].mxu0 }
 0x104   : > { %702 = vst [vmem:[%s1242_s5 + $0x158] sm:$0xff] %v932_v57  ;;  %668 = vst [vmem:[%s1242_s5 + $0x48] sm:$0xff] %v439_v58  ;;  %v567_v59 = vpop.f32.mrb[11].mxu1 }
 0x105   : > { %700 = vst [vmem:[%s1242_s5 + $0x148] sm:$0xff] %v567_v59 }
 0x108   : > { %v903_v60 = vpop.f32.mrb[12].mxu0 }
 0x109   : > { %673 = vst [vmem:[%s1242_s5 + $0x70] sm:$0xff] %v903_v60  ;;  %v935_v61 = vpop.f32.mrb[12].mxu1  ;;  %v452_v62 = vpop.f32.mrb[13].mxu0 }
 0x10a   : > { %705 = vst [vmem:[%s1242_s5 + $0x170] sm:$0xff] %v935_v61  ;;  %671 = vst [vmem:[%s1242_s5 + $0x60] sm:$0xff] %v452_v62  ;;  %v580_v63 = vpop.f32.mrb[13].mxu1  ;;  %v904_v0 = vpop.f32.mrb[14].mxu0 }
 0x10b   : > { %703 = vst [vmem:[%s1242_s5 + $0x160] sm:$0xff] %v580_v63  ;;  %674 = vst [vmem:[%s1242_s5 + $0x78] sm:$0xff] %v904_v0  ;;  %v936_v1 = vpop.f32.mrb[14].mxu1  ;;  %v455_v2 = vpop.f32.mrb[15].mxu0 }
 0x10c   : > { %706 = vst [vmem:[%s1242_s5 + $0x178] sm:$0xff] %v936_v1  ;;  %672 = vst [vmem:[%s1242_s5 + $0x68] sm:$0xff] %v455_v2  ;;  %v583_v3 = vpop.f32.mrb[15].mxu1 }
 0x10d   : > { %704 = vst [vmem:[%s1242_s5 + $0x168] sm:$0xff] %v583_v3 }
 0x110   : > { %v907_v4 = vpop.f32.mrb[16].mxu0 }
 0x111   : > { %677 = vst [vmem:[%s1242_s5 + $0x90] sm:$0xff] %v907_v4  ;;  %v939_v5 = vpop.f32.mrb[16].mxu1  ;;  %v468_v6 = vpop.f32.mrb[17].mxu0 }
 0x112   : > { %709 = vst [vmem:[%s1242_s5 + $0x190] sm:$0xff] %v939_v5  ;;  %675 = vst [vmem:[%s1242_s5 + $0x80] sm:$0xff] %v468_v6  ;;  %v596_v7 = vpop.f32.mrb[17].mxu1  ;;  %v908_v8 = vpop.f32.mrb[18].mxu0 }
 0x113   : > { %707 = vst [vmem:[%s1242_s5 + $0x180] sm:$0xff] %v596_v7  ;;  %678 = vst [vmem:[%s1242_s5 + $0x98] sm:$0xff] %v908_v8  ;;  %v940_v9 = vpop.f32.mrb[18].mxu1  ;;  %v471_v10 = vpop.f32.mrb[19].mxu0 }
 0x114   : > { %710 = vst [vmem:[%s1242_s5 + $0x198] sm:$0xff] %v940_v9  ;;  %676 = vst [vmem:[%s1242_s5 + $0x88] sm:$0xff] %v471_v10  ;;  %v599_v11 = vpop.f32.mrb[19].mxu1 }
 0x115   : > { %708 = vst [vmem:[%s1242_s5 + $0x188] sm:$0xff] %v599_v11 }
 0x118   : > { %v911_v12 = vpop.f32.mrb[20].mxu0 }
 0x119   : > { %681 = vst [vmem:[%s1242_s5 + $0xb0] sm:$0xff] %v911_v12  ;;  %v943_v13 = vpop.f32.mrb[20].mxu1  ;;  %v484_v14 = vpop.f32.mrb[21].mxu0 }
 0x11a   : > { %713 = vst [vmem:[%s1242_s5 + $0x1b0] sm:$0xff] %v943_v13  ;;  %679 = vst [vmem:[%s1242_s5 + $0xa0] sm:$0xff] %v484_v14  ;;  %v612_v15 = vpop.f32.mrb[21].mxu1  ;;  %v912_v16 = vpop.f32.mrb[22].mxu0 }
 0x11b   : > { %711 = vst [vmem:[%s1242_s5 + $0x1a0] sm:$0xff] %v612_v15  ;;  %682 = vst [vmem:[%s1242_s5 + $0xb8] sm:$0xff] %v912_v16  ;;  %v944_v17 = vpop.f32.mrb[22].mxu1  ;;  %v487_v18 = vpop.f32.mrb[23].mxu0 }
 0x11c   : > { %714 = vst [vmem:[%s1242_s5 + $0x1b8] sm:$0xff] %v944_v17  ;;  %680 = vst [vmem:[%s1242_s5 + $0xa8] sm:$0xff] %v487_v18  ;;  %v615_v19 = vpop.f32.mrb[23].mxu1 }
 0x11d   : > { %712 = vst [vmem:[%s1242_s5 + $0x1a8] sm:$0xff] %v615_v19 }
 0x120   : > { %v915_v20 = vpop.f32.mrb[24].mxu0 }
 0x121   : > { %685 = vst [vmem:[%s1242_s5 + $0xd0] sm:$0xff] %v915_v20  ;;  %v947_v21 = vpop.f32.mrb[24].mxu1  ;;  %v500_v22 = vpop.f32.mrb[25].mxu0 }
 0x122   : > { %717 = vst [vmem:[%s1242_s5 + $0x1d0] sm:$0xff] %v947_v21  ;;  %683 = vst [vmem:[%s1242_s5 + $0xc0] sm:$0xff] %v500_v22  ;;  %v628_v23 = vpop.f32.mrb[25].mxu1  ;;  %v916_v24 = vpop.f32.mrb[26].mxu0 }
 0x123   : > { %715 = vst [vmem:[%s1242_s5 + $0x1c0] sm:$0xff] %v628_v23  ;;  %686 = vst [vmem:[%s1242_s5 + $0xd8] sm:$0xff] %v916_v24  ;;  %v948_v25 = vpop.f32.mrb[26].mxu1  ;;  %v503_v26 = vpop.f32.mrb[27].mxu0 }
 0x124   : > { %718 = vst [vmem:[%s1242_s5 + $0x1d8] sm:$0xff] %v948_v25  ;;  %684 = vst [vmem:[%s1242_s5 + $0xc8] sm:$0xff] %v503_v26  ;;  %v631_v27 = vpop.f32.mrb[27].mxu1 }
 0x125   : > { %716 = vst [vmem:[%s1242_s5 + $0x1c8] sm:$0xff] %v631_v27 }
 0x127   : > { %730 = sbr.rel (!%p1117_p5) target bundleno = 330 (0x14a), region = 32 }
 0x128   : > { %v919_v28 = vpop.f32.mrb[28].mxu0 }
 0x129   : > { %689 = vst [vmem:[%s1242_s5 + $0xf0] sm:$0xff] %v919_v28  ;;  %v951_v29 = vpop.f32.mrb[28].mxu1  ;;  %v516_v30 = vpop.f32.mrb[29].mxu0 }
 0x12a   : > { %721 = vst [vmem:[%s1242_s5 + $0x1f0] sm:$0xff] %v951_v29  ;;  %687 = vst [vmem:[%s1242_s5 + $0xe0] sm:$0xff] %v516_v30  ;;  %v644_v31 = vpop.f32.mrb[29].mxu1  ;;  %v920_v32 = vpop.f32.mrb[30].mxu0 }
 0x12b   : > { %719 = vst [vmem:[%s1242_s5 + $0x1e0] sm:$0xff] %v644_v31  ;;  %690 = vst [vmem:[%s1242_s5 + $0xf8] sm:$0xff] %v920_v32  ;;  %v952_v33 = vpop.f32.mrb[30].mxu1  ;;  %v519_v34 = vpop.f32.mrb[31].mxu0 }
 0x12c   : > { %722 = vst [vmem:[%s1242_s5 + $0x1f8] sm:$0xff] %v952_v33  ;;  %688 = vst [vmem:[%s1242_s5 + $0xe8] sm:$0xff] %v519_v34  ;;  %v647_v35 = vpop.f32.mrb[31].mxu1 }
 0x12d   : > { %720 = vst [vmem:[%s1242_s5 + $0x1e8] sm:$0xff] %v647_v35 }
 0x12e   : > { %s1381_s7 = smov (!%p733_p11, %s732_s7), 64 }
 0x12f   : > { %s1315_s8 = sshll.u32 %s1381_s7, 7 }
 0x130   : > { %s737_s14 = ssub.s32 8192, %s1315_s8 }
 0x131   : > { %738 = vsyncadd %s1310_s6, %s737_s14  ;;  %p847_p12 = scmp.ne.s32.totalorder %s1315_s8, 0  ;;  %s853_s16 = sshll.u32 %s1100_s13, 13 }
 0x132   : > { %s1324_s21 = scalar_lea.hbm %s1373_s2, %s853_s16  ;;  %s743_s22 = sshll.u32 %s1242_s5, 4  ;;  %s1327_s22 = int_to_ptr.vmem [resolvable:$true] %s743_s22 }
 0x133   : > { %s997_s23 = scalar_lea.vmem %s1327_s22, %s1315_s8  ;;  %s1061_s24 = smov [#allocation2]  }
 0x134   : > { %p998_p13 = scmp.ne.s32.totalorder %s1327_s22, %s997_s23  ;;  %s1001_s25 = sshll.u32 %s1061_s24, 4  ;;  %s1002_s25 = int_to_ptr.vmem [resolvable:$false] %s1001_s25 }
 0x135   : > { %s1003_s13 = scalar_lea.vmem %s1002_s25, 16384  ;;  %p1004_p2 = scmp.lt.s32.totalorder %s1327_s22, %s1002_s25 }
 0x136   : > { %p999_p0 = pnand %p998_p13, %p847_p12  ;;  %p1005_p3 = scmp.lt.s32.totalorder %s1003_s13, %s997_s23 }
 0x138   : > { %p1000_p1 = pneg %p999_p0  ;;  %p1006_p4 = por %p1005_p3, %p1004_p2 }
 0x13a   : > { %p1007_p5 = pnand %p1006_p4, %p1000_p1 }
 0x13c   : > { %1010 = shalt.err (!%p1007_p5)
}
 0x13d   : > { %s1011_s26 = scalar_lea.hbm %s1324_s21, %s1315_s8  ;;  %s1015_s29 = scalar_lea.hbm %s1373_s2, 18432 }
 0x13e   : > { %p1012_p7 = scmp.ne.s32.totalorder %s1324_s21, %s1011_s26  ;;  %p1016_p10 = scmp.lt.u32.totalorder %s1324_s21, %s1373_s2 }
 0x13f   : > { %p1017_p11 = scmp.lt.u32.totalorder %s1015_s29, %s1011_s26  ;;  %p1019_p0 = scmp.lt.u32.totalorder %s1011_s26, %s1324_s21 }
 0x140   : > { %p1013_p8 = pnand %p1012_p7, %p847_p12 }
 0x141   : > { %p1018_p13 = por %p1017_p11, %p1016_p10 }
 0x142   : > { %p1014_p9 = pneg %p1013_p8 }
 0x143   : > { %p1020_p1 = por %p1019_p0, %p1018_p13 }
 0x145   : > { %p1021_p2 = pnand %p1020_p1, %p1014_p9 }
 0x147   : > { %1024 = shalt.err (!%p1021_p2)
}
 0x148   : > { %s1062_s4 = smov 128   ;;  %s1063_s5 = smov 8  }
 0x149   : > { %749 = dma.vmem_to_hbm [thread:$0]  (%p847_p12), %s1327_s22, %s1315_s8, %s1324_s21, %s1310_s6, %s1062_s4, %s1062_s4, %s1063_s5  }
 0x14a PF: > { %p962_p3 = scmp.ge.s32.totalorder %s1059_s12, 2  ;;  %s758_s7 = sand.u32 1, %s1047_s9  }
 0x14b   : > { %s759_s14 = scalar_lea.sflag [#allocation3], %s758_s7 }
 0x14c   : > { %p959_p4 = pnand %p962_p3, %p1121_p6 }
 0x14e   : > { %1042 = dma.done.wait (!%p959_p4), %s759_s14, 8192  }
 0x14f   : > { %1044 = vsyncadd (!%p959_p4), %s759_s14, 4294959104  ;;  %p12_p5 = scmp.ge.s32.totalorder %s1104_s15, 5   ;;  %s1376_s9 = smov %s1051_s10 }
 0x150   : > { %s1377_s10 = smov %s1055_s11  ;;  %s1378_s11 = smov %s1115_s18 }
 0x151   : > { %s1379_s12 = smov %s1104_s15  ;;  %14 = sbr.rel (!%p12_p5) target bundleno = 3 (0x3), region = 63 }
 0x158   :  { %764 = vsyncpa [#allocation3], 1 }
 0x159   :  { %766 = vsyncpa [#allocation3 + $0x1], 1 }

</bundles_post_ra>
